<compile_context>
chip_gen: v7x
topology: tpu7x:2x2x1
jax: 0.10.0
libtpu: 0.0.40
codegen_flags: <defaults>
</compile_context>

<pallas_src>
import math

import jax
import jax.numpy as jnp
from jax.experimental import pallas as pl
from jax.experimental.pallas import tpu as pltpu


def _round_up(a, b):
    return (a + b - 1) // b * b


# ---------------------------------------------------------------------------
# Kernels
# ---------------------------------------------------------------------------
def _posemb_proj_kernel(coef_ref, p_ref, x_ref, wug_ref, bg_ref, wdn_ref, o_ref):
    """One row-tile: pos -> fused (up|gate) matmul -> relu*up -> down -> +x."""
    d_pad = x_ref.shape[-1]

    # pos[r, j] = sin(p[r] * scaled_div[j] + phase[j]); phase folds cos into
    # sin, so exactly one EUP transcendental per element.
    arg = p_ref[...] * coef_ref[0:1, :] + coef_ref[1:2, :]
    pos = jnp.sin(arg)                                        # (TM, d_pad) f32

    # bf16 operands, f32 accumulation on the MXU; up and gate fused into one
    # matmul since they share the LHS.
    pos_bf = pos.astype(jnp.bfloat16)
    ug = jnp.dot(pos_bf, wug_ref[...], preferred_element_type=jnp.float32)
    up = ug[:, :d_pad]
    gate = ug[:, d_pad:] + bg_ref[...]
    h = (jnp.maximum(gate, 0.0) * up).astype(jnp.bfloat16)
    proj = jnp.dot(h, wdn_ref[...], preferred_element_type=jnp.float32)

    o_ref[...] = (x_ref[...] + proj).astype(o_ref.dtype)


def _posemb_noproj_kernel(coef_ref, p_ref, x_ref, o_ref):
    arg = p_ref[...] * coef_ref[0:1, :] + coef_ref[1:2, :]
    o_ref[...] = (x_ref[...] + jnp.sin(arg)).astype(o_ref.dtype)


# ---------------------------------------------------------------------------
# Wrapper
# ---------------------------------------------------------------------------
def position_embedding_streaming_head(x, time_intervals, params,
                                      *, time_periodicity, project,
                                      row_tile=512):
    """x: (B, S, d) f32; time_intervals: (B,) f32 or None."""
    B, S, d = x.shape
    dtype = x.dtype
    if time_intervals is None:
        time_intervals = jnp.ones((B,), dtype=jnp.float32)
    time_intervals = time_intervals.astype(jnp.float32)

    R = B * S
    d_pad = _round_up(d, 128)                 # lane-dense stores
    TM = min(row_tile, _round_up(R, 8))       # rows per grid step (mult. of 8)
    R_pad = _round_up(R, TM)

    # --- t-independent coefficients, hoisted out of the grid loop ----------
    j = jnp.arange(d_pad)
    scaled_div = (2.0 * math.pi / time_periodicity) * jnp.exp(
        ((j // 2) * 2).astype(jnp.float32) * (-math.log(10000.0) / d))
    phase = (math.pi / 2.0) * (j % 2).astype(jnp.float32)     # even->sin, odd->cos
    valid = j < d                                             # zero the pad cols
    coef = jnp.stack([jnp.where(valid, scaled_div, 0.0),
                      jnp.where(valid, phase, 0.0)], axis=0)  # (2, d_pad)

    # per-row adjusted position: p[b*S + s] = s * t[b]
    p = (jnp.arange(S, dtype=jnp.float32)[None, :]
         * time_intervals[:, None]).reshape(R, 1)

    x2 = x.reshape(R, d)
    if (R_pad, d_pad) != (R, d):
        x2 = jnp.pad(x2, ((0, R_pad - R), (0, d_pad - d)))
    if R_pad != R:
        p = jnp.pad(p, ((0, R_pad - R), (0, 0)))

    grid = (R_pad // TM,)
    coef_spec = pl.BlockSpec((2, d_pad), lambda i: (0, 0))
    p_spec = pl.BlockSpec((TM, 1), lambda i: (i, 0))
    x_spec = pl.BlockSpec((TM, d_pad), lambda i: (i, 0))
    out_spec = pl.BlockSpec((TM, d_pad), lambda i: (i, 0))
    cparams = pltpu.CompilerParams(
        dimension_semantics=("parallel",),
        vmem_limit_bytes=64 * 1024 * 1024,
    )

    if project:
        pad_w = d_pad - d

        def _pad_wt(w):  # torch Linear does y = x @ W.T, so pre-transpose
            wt = w.T
            if pad_w:
                wt = jnp.pad(wt, ((0, pad_w), (0, pad_w)))
            return wt

        w_ug = jnp.concatenate(
            [_pad_wt(params["w_up"]), _pad_wt(params["w_gate"])],
            axis=1).astype(jnp.bfloat16)                      # (d_pad, 2*d_pad)
        w_dn = _pad_wt(params["w_down"]).astype(jnp.bfloat16)  # (d_pad, d_pad)
        b_g = params["b_gate"].astype(jnp.float32)
        if pad_w:
            b_g = jnp.pad(b_g, (0, pad_w))
        b_g = b_g.reshape(1, d_pad)

        out = pl.pallas_call(
            _posemb_proj_kernel,
            out_shape=jax.ShapeDtypeStruct((R_pad, d_pad), dtype),
            grid_spec=pltpu.PrefetchScalarGridSpec(
                num_scalar_prefetch=0,
                grid=grid,
                in_specs=[coef_spec, p_spec, x_spec,
                          pl.BlockSpec((d_pad, 2 * d_pad), lambda i: (0, 0)),
                          pl.BlockSpec((1, d_pad), lambda i: (0, 0)),
                          pl.BlockSpec((d_pad, d_pad), lambda i: (0, 0))],
                out_specs=out_spec),
            compiler_params=cparams,
        )(coef, p, x2, w_ug, b_g, w_dn)
    else:
        out = pl.pallas_call(
            _posemb_noproj_kernel,
            out_shape=jax.ShapeDtypeStruct((R_pad, d_pad), dtype),
            grid_spec=pltpu.PrefetchScalarGridSpec(
                num_scalar_prefetch=0,
                grid=grid,
                in_specs=[coef_spec, p_spec, x_spec],
                out_specs=out_spec),
            compiler_params=cparams,
        )(coef, p, x2)

    return out[:R, :d].reshape(B, S, d)


# ---------------------------------------------------------------------------
# Pure-JAX reference (mirrors the PyTorch forward exactly, full f32)
# ---------------------------------------------------------------------------
def reference_forward(x, time_intervals, params, *, time_periodicity, project):
    B, S, d = x.shape
    if time_intervals is None:
        time_intervals = jnp.ones((B,), dtype=jnp.float32)
    adj = (jnp.arange(S, dtype=jnp.float32)[None, :]
           * time_intervals[:, None])[:, :, None]             # (B, S, 1)
    div_term = jnp.exp(jnp.arange(0, d, 2, dtype=jnp.float32)
                       * (-math.log(10000.0) / d))[None, None, :]
    sin = jnp.sin(2 * math.pi * adj * div_term / time_periodicity)
    cos = jnp.cos(2 * math.pi * adj * div_term / time_periodicity)
    pos = jnp.zeros((B, S, d), jnp.float32)
    pos = pos.at[:, :, 0::2].set(sin).at[:, :, 1::2].set(cos)
    if project:
        up = pos @ params["w_up"].T
        gate = pos @ params["w_gate"].T + params["b_gate"]
        pos = (jax.nn.relu(gate) * up) @ params["w_down"].T
    return x + pos


# ---------------------------------------------------------------------------
if __name__ == "__main__":
    B, S, d = 2, 8, 32
    time_periodicity = 10.0

    key = jax.random.PRNGKey(0)
    kx, kt, k1, k2, k3, k4 = jax.random.split(key, 6)

    x = jax.random.normal(kx, (B, S, d), dtype=jnp.float32)
    time_intervals = jax.random.uniform(kt, (B,), dtype=jnp.float32,
                                        minval=0.5, maxval=2.0)

    scale = 1.0 / math.sqrt(d)
    params = {
        "w_up":   jax.random.normal(k1, (d, d), jnp.float32) * scale,
        "w_gate": jax.random.normal(k2, (d, d), jnp.float32) * scale,
        "b_gate": jax.random.normal(k3, (d,), jnp.float32) * 0.1,
        "w_down": jax.random.normal(k4, (d, d), jnp.float32) * scale,
    }

    # --- projection path (bf16 MXU operands, f32 accumulation) -------------
    out_p = jax.block_until_ready(position_embedding_streaming_head(
        x, time_intervals, params,
        time_periodicity=time_periodicity, project=True))
    ref_p = reference_forward(x, time_intervals, params,
                              time_periodicity=time_periodicity, project=True)
    assert out_p.shape == (B, S, d)
    err_p = jnp.max(jnp.abs(out_p - ref_p))
    assert jnp.allclose(out_p, ref_p, atol=6e-2, rtol=6e-2), \
        f"projection path max abs err = {err_p}"

    # --- no-projection path (pure f32, time_intervals=None) ----------------
    out_n = jax.block_until_ready(position_embedding_streaming_head(
        x, None, None, time_periodicity=time_periodicity, project=False))
    ref_n = reference_forward(x, None, None,
                              time_periodicity=time_periodicity, project=False)
    assert out_n.shape == (B, S, d)
    err_n = jnp.max(jnp.abs(out_n - ref_n))
    assert jnp.allclose(out_n, ref_n, atol=1e-4, rtol=1e-4), \
        f"no-projection path max abs err = {err_n}"

    print("KERNEL_OK")
</pallas_src>

<mosaic_0001>
module attributes {stable_mosaic.version = 11 : i64} {
  func.func @_posemb_proj_kernel(%arg0: i32, %arg1: memref<2x128xf32, #tpu.memory_space<vmem>>, %arg2: memref<16x1xf32, #tpu.memory_space<vmem>>, %arg3: memref<16x128xf32, #tpu.memory_space<vmem>>, %arg4: memref<128x256xbf16, #tpu.memory_space<vmem>>, %arg5: memref<1x128xf32, #tpu.memory_space<vmem>>, %arg6: memref<128x128xbf16, #tpu.memory_space<vmem>>, %arg7: memref<16x128xf32, #tpu.memory_space<vmem>>) attributes {dimension_semantics = [#tpu.dimension_semantics<parallel>], iteration_bounds = array<i64: 1>, scalar_prefetch = 0 : i64, scratch_operands = 0 : i64, tpu.core_type = #tpu.core_type<tc>, window_params = [{pipeline_mode = #tpu.pipeline_mode<synchronous>, transform_indices = @transform_0, window_bounds = array<i64: 2, 128>}, {transform_indices = @transform_1, window_bounds = array<i64: 16, 1>}, {transform_indices = @transform_2, window_bounds = array<i64: 16, 128>}, {pipeline_mode = #tpu.pipeline_mode<synchronous>, transform_indices = @transform_3, window_bounds = array<i64: 128, 256>}, {pipeline_mode = #tpu.pipeline_mode<synchronous>, transform_indices = @transform_4, window_bounds = array<i64: 1, 128>}, {pipeline_mode = #tpu.pipeline_mode<synchronous>, transform_indices = @transform_5, window_bounds = array<i64: 128, 128>}, {transform_indices = @transform_6, window_bounds = array<i64: 16, 128>}]} {
    %c0 = arith.constant 0 : index
    %c0_0 = arith.constant 0 : index
    %0 = vector.load %arg2[%c0, %c0_0] : memref<16x1xf32, #tpu.memory_space<vmem>>, vector<16x1xf32>
    %c0_1 = arith.constant 0 : index
    %c0_2 = arith.constant 0 : index
    %1 = vector.load %arg1[%c0_1, %c0_2] : memref<2x128xf32, #tpu.memory_space<vmem>>, vector<1x128xf32>
    %2 = vector.broadcast %0 : vector<16x1xf32> to vector<16x128xf32>
    %3 = vector.broadcast %1 : vector<1x128xf32> to vector<16x128xf32>
    %4 = arith.mulf %2, %3 : vector<16x128xf32>
    %c1 = arith.constant 1 : index
    %c0_3 = arith.constant 0 : index
    %5 = vector.load %arg1[%c1, %c0_3] : memref<2x128xf32, #tpu.memory_space<vmem>>, vector<1x128xf32>
    %6 = vector.broadcast %5 : vector<1x128xf32> to vector<16x128xf32>
    %7 = arith.addf %4, %6 : vector<16x128xf32>
    %8 = math.sin %7 : vector<16x128xf32>
    %9 = arith.truncf %8 : vector<16x128xf32> to vector<16x128xbf16>
    %c0_4 = arith.constant 0 : index
    %c0_5 = arith.constant 0 : index
    %10 = vector.load %arg4[%c0_4, %c0_5] : memref<128x256xbf16, #tpu.memory_space<vmem>>, vector<128x256xbf16>
    %cst = arith.constant dense<0.000000e+00> : vector<16x256xf32>
    %11 = tpu.matmul %9, %10, %cst {dimension_numbers = #tpu.dot_dimension_numbers<[1], [0], [0], [1], [0, 0, 1, 1], [], []>} : vector<16x128xbf16>, vector<128x256xbf16>, vector<16x256xf32> -> vector<16x256xf32>
    %12 = vector.extract_strided_slice %11 {offsets = [0, 0], sizes = [16, 128], strides = [1, 1]} : vector<16x256xf32> to vector<16x128xf32>
    %13 = vector.extract_strided_slice %11 {offsets = [0, 128], sizes = [16, 128], strides = [1, 1]} : vector<16x256xf32> to vector<16x128xf32>
    %c0_6 = arith.constant 0 : index
    %c0_7 = arith.constant 0 : index
    %14 = vector.load %arg5[%c0_6, %c0_7] : memref<1x128xf32, #tpu.memory_space<vmem>>, vector<1x128xf32>
    %15 = vector.broadcast %14 : vector<1x128xf32> to vector<16x128xf32>
    %16 = arith.addf %13, %15 : vector<16x128xf32>
    %cst_8 = arith.constant 0.000000e+00 : f32
    %17 = vector.broadcast %cst_8 : f32 to vector<16x128xf32>
    %18 = arith.maximumf %16, %17 : vector<16x128xf32>
    %19 = arith.mulf %18, %12 : vector<16x128xf32>
    %20 = arith.truncf %19 : vector<16x128xf32> to vector<16x128xbf16>
    %c0_9 = arith.constant 0 : index
    %c0_10 = arith.constant 0 : index
    %21 = vector.load %arg6[%c0_9, %c0_10] : memref<128x128xbf16, #tpu.memory_space<vmem>>, vector<128x128xbf16>
    %cst_11 = arith.constant dense<0.000000e+00> : vector<16x128xf32>
    %22 = tpu.matmul %20, %21, %cst_11 {dimension_numbers = #tpu.dot_dimension_numbers<[1], [0], [0], [1], [0, 0, 1, 1], [], []>} : vector<16x128xbf16>, vector<128x128xbf16>, vector<16x128xf32> -> vector<16x128xf32>
    %c0_12 = arith.constant 0 : index
    %c0_13 = arith.constant 0 : index
    %23 = vector.load %arg3[%c0_12, %c0_13] : memref<16x128xf32, #tpu.memory_space<vmem>>, vector<16x128xf32>
    %24 = arith.addf %23, %22 : vector<16x128xf32>
    %c0_14 = arith.constant 0 : index
    %c0_15 = arith.constant 0 : index
    %25 = vector.load %arg7[%c0_14, %c0_15] : memref<16x128xf32, #tpu.memory_space<vmem>>, vector<16x128xf32>
    tpu.vector_store %arg7[%c0_14, %c0_15], %24 {strides = array<i32>} : memref<16x128xf32, #tpu.memory_space<vmem>>, vector<16x128xf32>,
    return
  }
  func.func @transform_0(%arg0: i32) -> (i32, i32) {
    %c0_i32 = arith.constant 0 : i32
    %c0_i32_0 = arith.constant 0 : i32
    %c0_i32_1 = arith.constant 0 : i32
    return %c0_i32, %c0_i32_0 : i32, i32
  }
  func.func @transform_1(%arg0: i32) -> (i32, i32) {
    %c0_i32 = arith.constant 0 : i32
    %c0_i32_0 = arith.constant 0 : i32
    return %arg0, %c0_i32 : i32, i32
  }
  func.func @transform_2(%arg0: i32) -> (i32, i32) {
    %c0_i32 = arith.constant 0 : i32
    %c0_i32_0 = arith.constant 0 : i32
    return %arg0, %c0_i32 : i32, i32
  }
  func.func @transform_3(%arg0: i32) -> (i32, i32) {
    %c0_i32 = arith.constant 0 : i32
    %c0_i32_0 = arith.constant 0 : i32
    %c0_i32_1 = arith.constant 0 : i32
    return %c0_i32, %c0_i32_0 : i32, i32
  }
  func.func @transform_4(%arg0: i32) -> (i32, i32) {
    %c0_i32 = arith.constant 0 : i32
    %c0_i32_0 = arith.constant 0 : i32
    %c0_i32_1 = arith.constant 0 : i32
    return %c0_i32, %c0_i32_0 : i32, i32
  }
  func.func @transform_5(%arg0: i32) -> (i32, i32) {
    %c0_i32 = arith.constant 0 : i32
    %c0_i32_0 = arith.constant 0 : i32
    %c0_i32_1 = arith.constant 0 : i32
    return %c0_i32, %c0_i32_0 : i32, i32
  }
  func.func @transform_6(%arg0: i32) -> (i32, i32) {
    %c0_i32 = arith.constant 0 : i32
    %c0_i32_0 = arith.constant 0 : i32
    return %arg0, %c0_i32 : i32, i32
  }
}

</mosaic_0001>

<bundles_post_ra>
// kernel: tpu_custom_call.1
= control target key start
LH: loop header
LB: loop body
LE: loop exit
PB: predicated region body
PF: predicated region fallthrough
CT: control target
= control target key end

     0   :  { %11 = vsyncpa [#allocation3], 0  ;;  %s1156_s0 = inlined_call_operand.hbm [shape: f32[2,128], index: 0, kind: input, shape index: {}]   ;;  %s1157_s1 = inlined_call_operand.hbm [shape: f32[16,1], index: 1, kind: input, shape index: {}]   ;;  %s1158_s2 = inlined_call_operand.hbm [shape: f32[16,128], index: 2, kind: input, shape index: {}]   ;;  %s1159_s3 = inlined_call_operand.hbm [shape: bf16[128,256], index: 3, kind: input, shape index: {}]   ;;  %s1160_s4 = inlined_call_operand.hbm [shape: f32[1,128], index: 4, kind: input, shape index: {}]   ;;  %s1161_s5 = inlined_call_operand.hbm [shape: bf16[128,128], index: 5, kind: input, shape index: {}]   ;;  %s1162_s6 = inlined_call_operand.hbm [shape: f32[16,128], index: 6, kind: output, shape index: {}]  }
   0x1   :  { %12 = vsyncpa [#allocation6], 0 }
   0x2   :  { %13 = vsyncpa [#allocation9], 0 }
   0x3   :  { %14 = vsyncpa [#allocation12], 0 }
   0x4   :  { %15 = vsyncpa [#allocation4], 0  ;;  %s919_s21 = smov [#allocation5]   ;;  %s755_s25 = scalar_lea.hbm %s1157_s1, 256 }
   0x5   :  { %s31_s22 = sshll.u32 %s919_s21, 4  ;;  %p756_p0 = scmp.ne.s32.totalorder %s1157_s1, %s755_s25  ;;  %s32_s22 = int_to_ptr.vmem [resolvable:$true] %s31_s22 }
   0x6   :  { %p759_p1 = scmp.lt.u32.totalorder %s755_s25, %s1157_s1 }
   0x8   :  { %p761_p2 = pnand %p759_p1, %p756_p0 }
   0xa   :  { %764 = shalt.err (!%p761_p2)
}
   0xb   :  { %s765_s30 = scalar_lea.vmem %s32_s22, 256  ;;  %p770_p4 = scmp.lt.s32.totalorder %s32_s22, %s32_s22 }
   0xc   :  { %p766_p3 = scmp.ne.s32.totalorder %s32_s22, %s765_s30  ;;  %p771_p5 = scmp.lt.s32.totalorder %s765_s30, %s765_s30 }
   0xe   :  { %p772_p6 = por %p771_p5, %p770_p4 }
  0x10   :  { %p773_p7 = pnand %p772_p6, %p766_p3 }
  0x12   :  { %776 = shalt.err (!%p773_p7)
}
  0x13   :  { %s920_s7 = smov 128   ;;  %s921_s8 = smov 8  }
  0x14   :  { %37 = dma.hbm_to_vmem [thread:$0]  %s1157_s1, 256, %s32_s22, [#allocation6], %s920_s7, %s920_s7, %s921_s8  }
  0x15   :  { %s922_s11 = smov [#allocation8]   ;;  %s923_s13 = smov [#allocation2]  }
  0x16   :  { %s55_s12 = sshll.u32 %s922_s11, 4  ;;  %s22_s14 = sshll.u32 %s923_s13, 4  ;;  %s56_s12 = int_to_ptr.vmem [resolvable:$true] %s55_s12  ;;  %s23_s14 = int_to_ptr.vmem [resolvable:$true] %s22_s14 }
  0x17   :  { %s777_s17 = scalar_lea.hbm %s1159_s3, 2048 }
  0x18   :  { %p778_p8 = scmp.ne.s32.totalorder %s1159_s3, %s777_s17  ;;  %p781_p9 = scmp.lt.u32.totalorder %s777_s17, %s1159_s3 }
  0x1a   :  { %p783_p10 = pnand %p781_p9, %p778_p8 }
  0x1c   :  { %786 = shalt.err (!%p783_p10)
}
  0x1d   :  { %s787_s1 = scalar_lea.vmem %s56_s12, 2048  ;;  %p792_p12 = scmp.lt.s32.totalorder %s56_s12, %s56_s12 }
  0x1e   :  { %p788_p11 = scmp.ne.s32.totalorder %s56_s12, %s787_s1  ;;  %p793_p13 = scmp.lt.s32.totalorder %s787_s1, %s787_s1 }
  0x20   :  { %p794_p0 = por %p793_p13, %p792_p12 }
  0x22   :  { %p795_p1 = pnand %p794_p0, %p788_p11 }
  0x24   :  { %798 = shalt.err (!%p795_p1)
}
  0x25   :  { %61 = dma.hbm_to_vmem [thread:$0]  %s1159_s3, 2048, %s56_s12, [#allocation9], %s920_s7, %s920_s7, %s921_s8  }
  0x26   :  { %s799_s26 = scalar_lea.hbm %s1156_s0, 32 }
  0x27   :  { %p800_p2 = scmp.ne.s32.totalorder %s1156_s0, %s799_s26  ;;  %p803_p3 = scmp.lt.u32.totalorder %s799_s26, %s1156_s0 }
  0x29   :  { %p805_p4 = pnand %p803_p3, %p800_p2 }
  0x2b   :  { %808 = shalt.err (!%p805_p4)
}
  0x2c   :  { %s809_s9 = scalar_lea.vmem %s23_s14, 32  ;;  %p814_p6 = scmp.lt.s32.totalorder %s23_s14, %s23_s14 }
  0x2d   :  { %p810_p5 = scmp.ne.s32.totalorder %s23_s14, %s809_s9  ;;  %p815_p7 = scmp.lt.s32.totalorder %s809_s9, %s809_s9 }
  0x2f   :  { %p816_p8 = por %p815_p7, %p814_p6 }
  0x31   :  { %p817_p9 = pnand %p816_p8, %p810_p5 }
  0x33   :  { %820 = shalt.err (!%p817_p9)
}
  0x34   :  { %25 = dma.hbm_to_vmem [thread:$0]  %s1156_s0, 32, %s23_s14, [#allocation3]  }
  0x35   :  { %s924_s11 = smov [#allocation7]   ;;  %s925_s13 = smov [#allocation10]  }
  0x36   :  { %s43_s12 = sshll.u32 %s924_s11, 4  ;;  %s68_s15 = sshll.u32 %s925_s13, 4  ;;  %s44_s12 = int_to_ptr.vmem [resolvable:$true] %s43_s12  ;;  %s69_s15 = int_to_ptr.vmem [resolvable:$true] %s68_s15 }
  0x37   :  { %s821_s18 = scalar_lea.hbm %s1158_s2, 256 }
  0x38   :  { %p822_p10 = scmp.ne.s32.totalorder %s1158_s2, %s821_s18  ;;  %p825_p11 = scmp.lt.u32.totalorder %s821_s18, %s1158_s2 }
  0x3a   :  { %p827_p12 = pnand %p825_p11, %p822_p10 }
  0x3c   :  { %830 = shalt.err (!%p827_p12)
}
  0x3d   :  { %s831_s0 = scalar_lea.vmem %s44_s12, 256  ;;  %p836_p0 = scmp.lt.s32.totalorder %s44_s12, %s44_s12 }
  0x3e   :  { %p832_p13 = scmp.ne.s32.totalorder %s44_s12, %s831_s0  ;;  %p837_p1 = scmp.lt.s32.totalorder %s831_s0, %s831_s0 }
  0x40   :  { %p838_p2 = por %p837_p1, %p836_p0 }
  0x42   :  { %p839_p3 = pnand %p838_p2, %p832_p13 }
  0x44   :  { %842 = shalt.err (!%p839_p3)
}
  0x45   :  { %49 = dma.hbm_to_vmem [thread:$0]  %s1158_s2, 256, %s44_s12, [#allocation6], %s920_s7, %s920_s7, %s921_s8  }
  0x46   :  { %s843_s25 = scalar_lea.hbm %s1160_s4, 16 }
  0x47   :  { %p844_p4 = scmp.ne.s32.totalorder %s1160_s4, %s843_s25  ;;  %p847_p5 = scmp.lt.u32.totalorder %s843_s25, %s1160_s4 }
  0x49   :  { %p849_p6 = pnand %p847_p5, %p844_p4 }
  0x4b   :  { %852 = shalt.err (!%p849_p6)
}
  0x4c   :  { %s853_s30 = scalar_lea.vmem %s69_s15, 16  ;;  %s857_s9 = scalar_lea.vmem %s69_s15, 32 }
  0x4d   :  { %p854_p7 = scmp.ne.s32.totalorder %s69_s15, %s853_s30  ;;  %p858_p8 = scmp.lt.s32.totalorder %s69_s15, %s69_s15 }
  0x4e   :  { %p859_p9 = scmp.lt.s32.totalorder %s857_s9, %s853_s30 }
  0x50   :  { %p860_p10 = por %p859_p9, %p858_p8 }
  0x52   :  { %p861_p11 = pnand %p860_p10, %p854_p7 }
  0x54   :  { %864 = shalt.err (!%p861_p11)
}
  0x55   :  { %71 = dma.hbm_to_vmem [thread:$0]  %s1160_s4, 16, %s69_s15, [#allocation9]  }
  0x56   :  { %s926_s10 = smov [#allocation11]   ;;  %s865_s16 = scalar_lea.hbm %s1161_s5, 1024 }
  0x57   :  { %s77_s11 = sshll.u32 %s926_s10, 4  ;;  %p866_p12 = scmp.ne.s32.totalorder %s1161_s5, %s865_s16  ;;  %s78_s11 = int_to_ptr.vmem [resolvable:$true] %s77_s11 }
  0x58   :  { %p869_p13 = scmp.lt.u32.totalorder %s865_s16, %s1161_s5 }
  0x5a   :  { %p871_p0 = pnand %p869_p13, %p866_p12 }
  0x5c   :  { %874 = shalt.err (!%p871_p0)
}
  0x5d   :  { %s875_s21 = scalar_lea.vmem %s78_s11, 1024  ;;  %p880_p2 = scmp.lt.s32.totalorder %s78_s11, %s78_s11 }
  0x5e   :  { %p876_p1 = scmp.ne.s32.totalorder %s78_s11, %s875_s21  ;;  %p881_p3 = scmp.lt.s32.totalorder %s875_s21, %s875_s21 }
  0x60   :  { %p882_p4 = por %p881_p3, %p880_p2 }
  0x62   :  { %p883_p5 = pnand %p882_p4, %p876_p1 }
  0x64   :  { %886 = shalt.err (!%p883_p5)
}
  0x65   :  { %s927_s4 = smov 64   ;;  %s928_s15 = smov 4  }
  0x66   :  { %83 = dma.hbm_to_vmem [thread:$0]  %s1161_s5, 1024, %s78_s11, [#allocation12], %s927_s4, %s927_s4, %s928_s15  }
  0x67   :  { %909 = dma.done.wait [#allocation3], 32  }
  0x68   :  { %910 = vsyncadd [#allocation3], 4294967264 }
  0x69   :  { %911 = dma.done.wait [#allocation6], 512  }
  0x6a   :  { %912 = vsyncadd [#allocation6], 4294966784 }
  0x6b   :  { %913 = dma.done.wait [#allocation9], 2064  }
  0x6c   :  { %914 = vsyncadd [#allocation9], 4294965232 }
  0x6d   :  { %915 = dma.done.wait [#allocation12], 1024  }
  0x6e   :  { %916 = vsyncadd [#allocation12], 4294966272  ;;  %v929_v0 = vmov 0   ;;  %v103_v1 = vld [vmem:[#allocation5] sm:$0xff]  ;;  %v104_v2 = vld [vmem:[#allocation5 + $0x8] sm:$0xff]  ;;  %v930_v20 = vmov 0.0  }
  0x6f   :  { %714 = vset.pattern.permute.xlu0 %v929_v0  ;;  %466 = vmatprep.mubr.bf16.mxu0 %v929_v0  ;;  %v715_v3 = vld [vmem:[#allocation8 + $0x4] ss:$8 sps:$4 sm:$0xff]   ;;  %v717_v4 = vld [vmem:[#allocation8] ss:$8 sps:$4 sm:$0xff]   ;;  %v718_v5 = vld [vmem:[#allocation8 + $0x14] ss:$8 sps:$4 sm:$0xff]  }
  0x70   :  { %108 = vperm.xlu0 %714, %v103_v1   ;;  %434 = vmatprep.subr.bf16.mxu0 %v715_v3  ;;  %v720_v6 = vld [vmem:[#allocation8 + $0x10] ss:$8 sps:$4 sm:$0xff]   ;;  %v721_v7 = vld [vmem:[#allocation8 + $0x24] ss:$8 sps:$4 sm:$0xff]   ;;  %v723_v8 = vld [vmem:[#allocation8 + $0x20] ss:$8 sps:$4 sm:$0xff]  }
  0x71   :  { %435 = vmatpush1.bf16.msra.mxu0 %v717_v4  ;;  %v724_v9 = vld [vmem:[#allocation8 + $0x34] ss:$8 sps:$4 sm:$0xff]   ;;  %v726_v10 = vld [vmem:[#allocation8 + $0x30] ss:$8 sps:$4 sm:$0xff]   ;;  %v727_v11 = vld [vmem:[#allocation8 + $0x44] ss:$8 sps:$4 sm:$0xff]   ;;  %666 = vmatprep.subr.bf16.mxu1 %v930_v20 }
  0x72   :  { %436 = vmatprep.subr.bf16.mxu0 %v718_v5  ;;  %v729_v12 = vld [vmem:[#allocation8 + $0x40] ss:$8 sps:$4 sm:$0xff]   ;;  %v730_v13 = vld [vmem:[#allocation8 + $0x54] ss:$8 sps:$4 sm:$0xff]   ;;  %v732_v14 = vld [vmem:[#allocation8 + $0x50] ss:$8 sps:$4 sm:$0xff]  }
  0x73   :  { %v733_v15 = vld [vmem:[#allocation8 + $0x64] ss:$8 sps:$4 sm:$0xff]   ;;  %v735_v16 = vld [vmem:[#allocation8 + $0x60] ss:$8 sps:$4 sm:$0xff]   ;;  %v736_v17 = vld [vmem:[#allocation8 + $0x74] ss:$8 sps:$4 sm:$0xff]  }
  0x74   :  { %113 = vperm.xlu0 %714, %v104_v2   ;;  %v738_v18 = vld [vmem:[#allocation8 + $0x70] ss:$8 sps:$4 sm:$0xff]   ;;  %v739_v19 = vld [vmem:[#allocation11] sm:$0xff]   ;;  %v622_v25 = vld [vmem:[#allocation2] ss:$0 sm:$0xff]  ;;  %s938_s5 = smov [#allocation13]  }
  0x75   :  { %437 = vmatpush1.bf16.msra.mxu0 %v720_v6  ;;  %667 = vmatpush3.bf16.msra.mxu1 %v739_v19  ;;  %v740_v21 = vld [vmem:[#allocation11 + $0x8] sm:$0xff]   ;;  %v741_v22 = vld [vmem:[#allocation11 + $0x10] sm:$0xff]   ;;  %v742_v23 = vld [vmem:[#allocation11 + $0x18] sm:$0xff]   ;;  %v931_v49 = vmov 683565275   ;;  %s607_s14 = sshll.u32 %s938_s5, 4  ;;  %s608_s14 = int_to_ptr.vmem [resolvable:$true] %s607_s14 }
  0x76   :  { %438 = vmatprep.subr.bf16.mxu0 %v721_v7  ;;  %668 = vmatprep.subr.bf16.mxu1 %v930_v20  ;;  %v743_v24 = vld [vmem:[#allocation11 + $0x20] sm:$0xff]   ;;  %v623_v26 = vld [vmem:[#allocation2 + $0x1] ss:$0 sm:$0xff]  ;;  %v932_v53 = vmov 2475754826   ;;  %s887_s22 = scalar_lea.vmem %s608_s14, 256  ;;  %p892_p7 = scmp.lt.s32.totalorder %s608_s14, %s608_s14 }
  0x77   :  { %v933_v55 = vmov 2131351028   ;;  %v934_v57 = vmov 2102212464   ;;  %v935_v59 = vmov 920167782   ;;  %p888_p6 = scmp.ne.s32.totalorder %s608_s14, %s887_s22  ;;  %p893_p8 = scmp.lt.s32.totalorder %s887_s22, %s887_s22 }
  0x78   :  { %v936_v2 = vmov 1326507024  }
  0x79   :  { %439 = vmatpush1.bf16.msra.mxu0 %v723_v8  ;;  %669 = vmatpush3.bf16.msra.mxu1 %v740_v21  ;;  %p894_p9 = por %p893_p8, %p892_p7 }
  0x7a   :  { %440 = vmatprep.subr.bf16.mxu0 %v724_v9  ;;  %670 = vmatprep.subr.bf16.mxu1 %v930_v20 }
  0x7b   :  { %p895_p10 = pnand %p894_p9, %p888_p6 }
  0x7d   :  { %441 = vmatpush1.bf16.msra.mxu0 %v726_v10  ;;  %671 = vmatpush3.bf16.msra.mxu1 %v741_v22 }
  0x7e   :  { %442 = vmatprep.subr.bf16.mxu0 %v727_v11  ;;  %672 = vmatprep.subr.bf16.mxu1 %v930_v20 }
  0x81   :  { %443 = vmatpush1.bf16.msra.mxu0 %v729_v12  ;;  %673 = vmatpush3.bf16.msra.mxu1 %v742_v23 }
  0x82   :  { %444 = vmatprep.subr.bf16.mxu0 %v730_v13  ;;  %674 = vmatprep.subr.bf16.mxu1 %v930_v20 }
  0x85   :  { %445 = vmatpush1.bf16.msra.mxu0 %v732_v14  ;;  %675 = vmatpush3.bf16.msra.mxu1 %v743_v24 }
  0x86   :  { %446 = vmatprep.subr.bf16.mxu0 %v733_v15  ;;  %676 = vmatprep.subr.bf16.mxu1 %v930_v20 }
  0x89   :  { %447 = vmatpush1.bf16.msra.mxu0 %v735_v16 }
  0x8a   :  { %448 = vmatprep.subr.bf16.mxu0 %v736_v17 }
  0x8d   :  { %449 = vmatpush1.bf16.msra.mxu0 %v738_v18 }
  0xef   :  { %v109_v27 = vpop.permute.xlu0 %108 }
  0xf0   :  { %v120_v28 = vmul.f32 %v622_v25, %v109_v27 }
  0xf2   :  { %v1061_v29 = vadd.f32 %v623_v26, %v120_v28 }
  0xf3   :  { %v114_v30 = vpop.permute.xlu0 %113 }
  0xf4   :  { %v129_v31 = vand.u32 2147483647, %v1061_v29  ;;  %v132_v32 = vand.u32 2139095040, %v1061_v29  ;;  %v121_v33 = vmul.f32 %v622_v25, %v114_v30  ;;  %vm131_vm14 = vcmp.lt.s32.totalorder %v1061_v29, 0 }
  0xf6   :  { %v133_v34 = vshrl.u32 %v132_v32, 23  ;;  %v1065_v35 = vadd.f32 %v623_v26, %v121_v33  ;;  %v136_v36 = vand.u32 8388607, %v129_v31  ;;  %vm1119_vm15 = vcmp.le.f32.partialorder %v129_v31, 0.7853982 }
  0xf8   :  { %v624_v37 = vadd.s32 4294967169, %v133_v34  ;;  %v236_v38 = vand.u32 2139095040, %v1065_v35  ;;  %v137_v40 = vor.u32 8388608, %v136_v36  ;;  %v233_v42 = vand.u32 2147483647, %v1065_v35 }
  0xfa   :  { %v139_v39 = vadd.s32 1, %v624_v37  ;;  %v237_v41 = vshrl.u32 %v236_v38, 23  ;;  %v1071_v47 = vshll.u32 %v137_v40, 8  ;;  %v240_v51 = vand.u32 8388607, %v233_v42 }
  0xfc   :  { %vm140_vm0 = vcmp.gt.s32.totalorder %v139_v39, 0  ;;  %v628_v44 = vadd.s32 4294967169, %v237_v41  ;;  %v241_v17 = vor.u32 8388608, %v240_v51 }
  0xfd   :  { %v141_v43 = vsel %vm140_vm0, %v139_v39, 0  ;;  %vm235_vm0 = vcmp.lt.s32.totalorder %v1065_v35, 0 }
  0xfe   :  { %v142_v45 = vshrl.u32 %v141_v43, 5  ;;  %v143_v46 = vand.u32 31, %v141_v43  ;;  %v243_v52 = vadd.s32 1, %v628_v44  ;;  %v281_v33 = vshll.u32 %v241_v17, 8 }
 0x100   :  { %v144_v48 = vsub.s32 32, %v143_v46  ;;  %v146_v50 = vshll.u32 %v931_v49, %v143_v46  ;;  %v149_v54 = vshll.u32 %v932_v53, %v143_v46  ;;  %v152_v56 = vshll.u32 %v933_v55, %v143_v46 }
 0x101   :  { %v155_v58 = vshll.u32 %v934_v57, %v143_v46  ;;  %v158_v60 = vshll.u32 %v935_v59, %v143_v46  ;;  %vm161_vm1 = vcmp.lt.s32.totalorder %v142_v45, 1  ;;  %vm163_vm2 = vcmp.lt.s32.totalorder %v142_v45, 3 }
 0x102   :  { %v147_v61 = vshrl.u32 %v932_v53, %v144_v48  ;;  %v150_v62 = vshrl.u32 %v933_v55, %v144_v48  ;;  %v153_v63 = vshrl.u32 %v934_v57, %v144_v48  ;;  %v145_v0 = vshrl.u32 %v931_v49, %v144_v48 }
 0x103   :  { %v156_v1 = vshrl.u32 %v935_v59, %v144_v48  ;;  %v159_v3 = vshrl.u32 %v936_v2, %v144_v48  ;;  %vm244_vm3 = vcmp.gt.s32.totalorder %v243_v52, 0  ;;  %vm164_vm4 = vcmp.lt.s32.totalorder %v142_v45, 4 }
 0x104   :  { %v148_v4 = vor.u32 %v147_v61, %v146_v50  ;;  %v151_v5 = vor.u32 %v150_v62, %v149_v54  ;;  %v154_v6 = vor.u32 %v153_v63, %v152_v56  ;;  %v245_v9 = vsel %vm244_vm3, %v243_v52, 0 }
 0x105   :  { %v157_v7 = vor.u32 %v156_v1, %v155_v58  ;;  %v160_v8 = vor.u32 %v159_v3, %v158_v60  ;;  %vm162_vm5 = vcmp.lt.s32.totalorder %v142_v45, 2  ;;  %v247_v21 = vand.u32 31, %v245_v9 }
 0x106   :  { %v165_v10 = vsel %vm161_vm1, %v145_v0, %v148_v4  ;;  %v166_v11 = vsel %vm164_vm4, %v154_v6, 2102212464  ;;  %v169_v12 = vsel %vm161_vm1, %v148_v4, %v151_v5  ;;  %v173_v13 = vsel %vm161_vm1, %v151_v5, %v154_v6 }
 0x107   :  { %v167_v14 = vsel %vm163_vm2, %v151_v5, %v166_v11  ;;  %v170_v15 = vsel %vm164_vm4, %v157_v7, 920167782  ;;  %v174_v16 = vsel %vm164_vm4, %v160_v8, 1326507024  ;;  %v246_v30 = vshrl.u32 %v245_v9, 5 }
 0x108   :  { %v171_v18 = vsel %vm163_vm2, %v154_v6, %v170_v15  ;;  %v175_v19 = vsel %vm163_vm2, %v157_v7, %v174_v16  ;;  %v168_v22 = vsel %vm162_vm5, %v165_v10, %v167_v14  ;;  %v248_v32 = vsub.s32 32, %v247_v21 }
 0x109   :  { %v172_v23 = vsel %vm162_vm5, %v169_v12, %v171_v18  ;;  %v176_v24 = vsel %vm162_vm5, %v173_v13, %v175_v19  ;;  %v184_v34 = vmul.u32 %v1071_v47, %v168_v22  ;;  %v250_v36 = vshll.u32 %v931_v49, %v247_v21 }
 0x10a   :  { %v1084_v25 = vmul.u32.u64.low %v1071_v47, %v176_v24  ;;  %v1085_v26 = vmul.u32.u64.high %v1071_v47, %v176_v24, %v1084_v25  ;;  %v1088_v27 = vmul.u32.u64.low %v1071_v47, %v172_v23  ;;  %v1089_v28 = vmul.u32.u64.high %v1071_v47, %v172_v23, %v1088_v27 }
 0x10b   :  { %v253_v37 = vshll.u32 %v932_v53, %v247_v21  ;;  %v256_v38 = vshll.u32 %v933_v55, %v247_v21  ;;  %v251_v39 = vshrl.u32 %v932_v53, %v248_v32  ;;  %v254_v40 = vshrl.u32 %v933_v55, %v248_v32 }
 0x10c   :  { %v257_v41 = vshrl.u32 %v934_v57, %v248_v32  ;;  %v259_v43 = vshll.u32 %v934_v57, %v247_v21  ;;  %vm186_vm6 = vc.u32 %v1085_v26, %v1088_v27  ;;  %v187_v44 = vadd.s32 1, %v1089_v28 }
 0x10d   :  { %v260_v45 = vshrl.u32 %v935_v59, %v248_v32  ;;  %v262_v46 = vshll.u32 %v935_v59, %v247_v21  ;;  %v252_v48 = vor.u32 %v251_v39, %v250_v36  ;;  %v255_v50 = vor.u32 %v254_v40, %v253_v37 }
 0x10e   :  { %v258_v51 = vor.u32 %v257_v41, %v256_v38  ;;  %v263_v52 = vshrl.u32 %v936_v2, %v248_v32  ;;  %v188_v47 = vsel %vm186_vm6, %v187_v44, %v1089_v28  ;;  %vm265_vm7 = vcmp.lt.s32.totalorder %v246_v30, 1 }
 0x10f   :  { %v261_v54 = vor.u32 %v260_v45, %v259_v43  ;;  %vm268_vm8 = vcmp.lt.s32.totalorder %v246_v30, 4  ;;  %v189_v53 = vadd.s32 %v188_v47, %v184_v34  ;;  %vm267_vm9 = vcmp.lt.s32.totalorder %v246_v30, 3 }
 0x110   :  { %v264_v55 = vor.u32 %v263_v52, %v262_v46  ;;  %v270_v56 = vsel %vm268_vm8, %v258_v51, 2102212464  ;;  %v249_v57 = vshrl.u32 %v931_v49, %v248_v32  ;;  %v273_v58 = vsel %vm265_vm7, %v252_v48, %v255_v50 }
 0x111   :  { %v274_v60 = vsel %vm268_vm8, %v261_v54, 920167782  ;;  %v277_v61 = vsel %vm265_vm7, %v255_v50, %v258_v51  ;;  %v190_v62 = vadd.s32 536870912, %v189_v53  ;;  %vm266_vm10 = vcmp.lt.s32.totalorder %v246_v30, 2 }
 0x112   :  { %v275_v59 = vsel %vm267_vm9, %v258_v51, %v274_v60  ;;  %v278_v63 = vsel %vm268_vm8, %v264_v55, 1326507024  ;;  %v269_v0 = vsel %vm265_vm7, %v249_v57, %v252_v48  ;;  %v271_v1 = vsel %vm267_vm9, %v255_v50, %v270_v56 }
 0x113   :  { %v276_v2 = vsel %vm266_vm10, %v273_v58, %v275_v59  ;;  %v279_v3 = vsel %vm267_vm9, %v261_v54, %v278_v63  ;;  %v1099_v4 = vshrl.u32 %v190_v62, 30  ;;  %v272_v10 = vsel %vm266_vm10, %v269_v0, %v271_v1 }
 0x114   :  { %v280_v5 = vsel %vm266_vm10, %v277_v61, %v279_v3  ;;  %v1101_v6 = vmul.u32.u64.low %v281_v33, %v276_v2  ;;  %v1102_v7 = vmul.u32.u64.high %v281_v33, %v276_v2, %v1101_v6  ;;  %v288_v13 = vmul.u32 %v281_v33, %v272_v10 }
 0x115   :  { %v1104_v8 = vmul.u32.u64.low %v281_v33, %v280_v5  ;;  %v1105_v9 = vmul.u32.u64.high %v281_v33, %v280_v5, %v1104_v8  ;;  %v192_v49 = vshll.u32 %v1099_v4, 30  ;;  %v185_v28 = vadd.s32 %v1088_v27, %v1085_v26 }
 0x116   :  { %v291_v12 = vadd.s32 1, %v1102_v7  ;;  %v215_v62 = vsub.s32 4, %v1099_v4  ;;  %vm234_vm1 = vcmp.le.f32.partialorder %v233_v42, 0.7853982  ;;  %vm221_vm8 = vweird.f32 %v1061_v29 }
 0x117   :  { %v193_v11 = vsub.s32 %v189_v53, %v192_v49  ;;  %vm290_vm11 = vc.u32 %v1105_v9, %v1101_v6  ;;  %v289_v51 = vadd.s32 %v1101_v6, %v1105_v9  ;;  %vm325_vm9 = vweird.f32 %v1065_v35 }
 0x118   :  { %v292_v15 = vsel %vm290_vm11, %v291_v12, %v1102_v7  ;;  %v216_v31 = vsel %vm131_vm14, %v215_v62, %v1099_v4  ;;  %vm937_vm10 = vmmov 0  }
 0x119   :  { %v195_v14 = vsub.s32 0, %v193_v11  ;;  %v293_v16 = vadd.s32 %v292_v15, %v288_v13  ;;  %v218_v5 = vsel %vm1119_vm15, 0, %v216_v31  ;;  %682 = vmatprep.mubr.msk.bf16.mxu1 %vm937_vm10, %v930_v20 }
 0x11a   :  { %v222_v8 = vadd.s32 3, %v218_v5 }
 0x11b   :  { %v625_v17 = vmin.u32 %v195_v14, %v193_v11  ;;  %v294_v18 = vadd.s32 536870912, %v293_v16 }
 0x11d   :  { %v197_v19 = vclz %v625_v17  ;;  %v295_v21 = vshrl.u32 %v294_v18, 30 }
 0x11f   :  { %v626_v22 = vadd.s32 4294967294, %v197_v19  ;;  %v296_v23 = vshll.u32 %v295_v21, 30  ;;  %v319_v1 = vsub.s32 4, %v295_v21 }
 0x121   :  { %vm627_vm12 = vcmp.lt.s32.totalorder %v626_v22, 0  ;;  %v297_v25 = vsub.s32 %v293_v16, %v296_v23  ;;  %v320_v6 = vsel %vm235_vm0, %v319_v1, %v295_v21 }
 0x122   :  { %v200_v24 = vsel %vm627_vm12, 0, %v626_v22  ;;  %v322_v9 = vsel %vm234_vm1, 0, %v320_v6 }
 0x123   :  { %v201_v30 = vsub.s32 32, %v200_v24  ;;  %v205_v32 = vsub.s32 4294967266, %v200_v24  ;;  %v299_v33 = vsub.s32 0, %v297_v25  ;;  %v202_v34 = vshll.u32 %v193_v11, %v200_v24 }
 0x124   :  { %v326_v4 = vadd.s32 3, %v322_v9  ;;  %v223_v11 = vand.u32 3, %v222_v8 }
 0x125   :  { %v203_v36 = vshrl.u32 %v185_v28, %v201_v30  ;;  %v206_v37 = vadd.s32 127, %v205_v32  ;;  %v629_v38 = vmin.u32 %v299_v33, %v297_v25  ;;  %v744_v32 = vld [vmem:[#allocation11 + $0x28] sm:$0xff]   ;;  %v745_v33 = vld [vmem:[#allocation11 + $0x30] sm:$0xff]  }
 0x126   :  { %v327_v14 = vand.u32 3, %v326_v4  ;;  %vm225_vm2 = vcmp.eq.s32.totalorder %v223_v11, 0  ;;  %vm228_vm3 = vcmp.eq.s32.totalorder %v223_v11, 2  ;;  %vm224_vm4 = vcmp.lt.s32.totalorder %v223_v11, 2  ;;  %677 = vmatpush3.bf16.msra.mxu1 %v744_v32 }
 0x127   :  { %v204_v39 = vor.u32 %v203_v36, %v202_v34  ;;  %v207_v40 = vshll.u32 %v206_v37, 23  ;;  %v301_v41 = vclz %v629_v38  ;;  %678 = vmatprep.subr.bf16.mxu1 %v930_v20  ;;  %v746_v34 = vld [vmem:[#allocation11 + $0x38] sm:$0xff]  }
 0x128   :  { %vm332_vm5 = vcmp.eq.s32.totalorder %v327_v14, 2  ;;  %vm329_vm6 = vcmp.eq.s32.totalorder %v327_v14, 0  ;;  %vm328_vm7 = vcmp.lt.s32.totalorder %v327_v14, 2 }
 0x129   :  { %v208_v43 = vor.u32 4788187, %v207_v40  ;;  %v630_v44 = vadd.s32 4294967294, %v301_v41  ;;  %v211_v46 = vcvt.s32.f32 %v204_v39 }
 0x12a   :  { %679 = vmatpush3.bf16.msra.mxu1 %v745_v33 }
 0x12b   :  { %v209_v45 = vand.u32 2147483647, %v208_v43  ;;  %vm631_vm13 = vcmp.lt.s32.totalorder %v630_v44, 0  ;;  %680 = vmatprep.subr.bf16.mxu1 %v930_v20 }
 0x12c   :  { %v304_v50 = vsel %vm631_vm13, 0, %v630_v44 }
 0x12d   :  { %v212_v48 = vmul.f32 %v211_v46, %v209_v45  ;;  %v305_v26 = vsub.s32 32, %v304_v50  ;;  %v309_v27 = vsub.s32 4294967266, %v304_v50  ;;  %v306_v47 = vshll.u32 %v297_v25, %v304_v50 }
 0x12e   :  { %681 = vmatpush3.bf16.msra.mxu1 %v746_v34 }
 0x12f   :  { %v213_v52 = vxor.u32 2147483648, %v212_v48  ;;  %v307_v54 = vshrl.u32 %v289_v51, %v305_v26  ;;  %v310_v53 = vadd.s32 127, %v309_v27  ;;  %v597_v51 = vld [vmem:[#allocation7 + $0x8] sm:$0xff] }
 0x131   :  { %v214_v55 = vsel %vm131_vm14, %v213_v52, %v212_v48  ;;  %v308_v56 = vor.u32 %v307_v54, %v306_v47  ;;  %v311_v57 = vshll.u32 %v310_v53, 23  ;;  %v596_v48 = vld [vmem:[#allocation7] sm:$0xff] }
 0x132   :  { %v217_v60 = vsel %vm1119_vm15, %v1061_v29, %v214_v55  ;;  %v648_v29 = vld [vmem:[#allocation10] ss:$0 sm:$0xff] }
 0x133   :  { %v312_v61 = vor.u32 4788187, %v311_v57  ;;  %v315_v63 = vcvt.s32.f32 %v308_v56  ;;  %747 = vcosq.f32 %v217_v60 }
 0x134   :  { %749 = vsinq.f32 %v217_v60 }
 0x135   :  { %v313_v59 = vand.u32 2147483647, %v312_v61 }
 0x137   :  { %v316_v0 = vmul.f32 %v315_v63, %v313_v59 }
 0x139   :  { %v317_v2 = vxor.u32 2147483648, %v316_v0 }
 0x13b   :  { %v318_v3 = vsel %vm235_vm0, %v317_v2, %v316_v0 }
 0x13c   :  { %v321_v7 = vsel %vm234_vm1, %v1065_v35, %v318_v3 }
 0x13d   :  { %751 = vcosq.f32 %v321_v7  ;;  %v748_v49 = vpop.eup %747 }
 0x13e   :  { %753 = vsinq.f32 %v321_v7  ;;  %v750_v10 = vpop.eup %749  ;;  %v229_v13 = vxor.u32 2147483648, %v748_v49 }
 0x13f   :  { %v226_v12 = vxor.u32 2147483648, %v750_v10 }
 0x140   :  { %v230_v17 = vsel %vm228_vm3, %v229_v13, %v750_v10 }
 0x141   :  { %v227_v16 = vsel %vm225_vm2, %v748_v49, %v226_v12 }
 0x142   :  { %v231_v21 = vsel %vm224_vm4, %v227_v16, %v230_v17 }
 0x143   :  { %v232_v25 = vsel %vm221_vm8, nan, %v231_v21 }
 0x147   :  { %v752_v15 = vpop.eup %751 }
 0x148   :  { %v754_v42 = vpop.eup %753  ;;  %v333_v18 = vxor.u32 2147483648, %v752_v15 }
 0x149   :  { %v330_v19 = vxor.u32 2147483648, %v754_v42 }
 0x14a   :  { %v334_v22 = vsel %vm332_vm5, %v333_v18, %v754_v42 }
 0x14b   :  { %v331_v23 = vsel %vm329_vm6, %v752_v15, %v330_v19 }
 0x14c   :  { %v335_v24 = vsel %vm328_vm7, %v331_v23, %v334_v22 }
 0x14d   :  { %v336_v28 = vsel %vm325_vm9, nan, %v335_v24 }
 0x14e   :  { %v337_v30 = vpack.c.bf16 %v336_v28, %v232_v25 }
 0x150   :  { %467 = vmatmul.mubr.bf16.vlgmr.msra.gmra.mrb[0].mxu0 %v337_v30 }
 0x223   :  { %v468_v35 = vpop.f32.mrb[0].mxu0 }
 0x224   :  { %v470_v36 = vpop.f32.mrb[1].mxu0 }
 0x225   :  { %v484_v37 = vadd.f32 %v648_v29, %v470_v36  ;;  %v472_v38 = vpop.f32.mrb[2].mxu0 }
 0x226   :  { %v474_v39 = vpop.f32.mrb[3].mxu0 }
 0x227   :  { %v486_v40 = vmax.f32 %v484_v37, 0.0  ;;  %v485_v41 = vadd.f32 %v648_v29, %v474_v39 }
 0x229   :  { %v488_v43 = vmul.f32 %v486_v40, %v468_v35  ;;  %v487_v44 = vmax.f32 %v485_v41, 0.0 }
 0x22b   :  { %v489_v45 = vmul.f32 %v487_v44, %v472_v38 }
 0x22d   :  { %v490_v46 = vpack.c.bf16 %v489_v45, %v488_v43 }
 0x22f   :  { %683 = vmatmul.mubr.bf16.vlgmr.msra.gmra.mrb[0].mxu1 %v490_v46 }
 0x302   :  { %v589_v50 = vpop.f32.mrb[0].mxu1 }
 0x303   :  { %v598_v20 = vadd.f32 %v596_v48, %v589_v50  ;;  %v684_v26 = vpop.f32.mrb[1].mxu1 }
 0x304   :  { %v592_v27 = vpop.f32.mrb[2].mxu1 }
 0x305   :  { %600 = vst [vmem:[#allocation13] sm:$0xff] %v598_v20  ;;  %v599_v52 = vadd.f32 %v597_v51, %v592_v27  ;;  %v685_v47 = vpop.f32.mrb[3].mxu1 }
 0x307   :  { %601 = vst [vmem:[#allocation13 + $0x8] sm:$0xff] %v599_v52 }
 0x308   :  { %898 = shalt.err (!%p895_p10)
}
 0x309   :  { %s899_s25 = scalar_lea.hbm %s1162_s6, 256 }
 0x30a   :  { %p900_p11 = scmp.ne.s32.totalorder %s1162_s6, %s899_s25  ;;  %p903_p12 = scmp.lt.u32.totalorder %s899_s25, %s1162_s6 }
 0x30c   :  { %p905_p13 = pnand %p903_p12, %p900_p11 }
 0x30e   :  { %908 = shalt.err (!%p905_p13)
}
 0x30f   :  { %613 = dma.vmem_to_hbm [thread:$0]  %s608_s14, 256, %s1162_s6, [#allocation4], %s920_s7, %s920_s7, %s921_s8  }
 0x310   :  { %917 = dma.done.wait [#allocation4], 256  }
 0x311   :  { %918 = vsyncadd [#allocation4], 4294967040 }
 0x312   :  { %617 = vsyncpa [#allocation3], 1 }
 0x313   :  { %618 = vsyncpa [#allocation6], 1 }
 0x314   :  { %619 = vsyncpa [#allocation9], 1 }
 0x315   :  { %620 = vsyncpa [#allocation12], 1 }
 0x316   :  { %621 = vsyncpa [#allocation4], 1 }

</bundles_post_ra>
